<compile_context>
chip_gen: v5e
topology: v5e:2x2
jax: 0.10.0
libtpu: 0.0.40
codegen_flags: <defaults>
</compile_context>

<pallas_src>
import math
from typing import NamedTuple, Optional

import jax
import jax.numpy as jnp
from jax.experimental import pallas as pl
from jax.experimental.pallas import tpu as pltpu


def _round_up(x, m):
    return ((x + m - 1) // m) * m


def _vmem_capacity_bytes():
    """Physical VMEM of the local chip (128 MiB on v5e/v6e, 64 MiB per TC on v7x)."""
    try:
        return int(pltpu.get_tpu_info().vmem_capacity_bytes)
    except Exception:
        return 64 << 20  # conservative fallback (v7x-sized)


# --------------------------------------------------------------------------- #
# Kernels
# --------------------------------------------------------------------------- #
def _lm_head_kernel_acc(x_ref, w_ref, b_ref, o_ref, acc_ref):
    """Multi-step K reduction: f32 VMEM accumulator resident across the K axis."""
    k = pl.program_id(2)
    contrib = jnp.dot(x_ref[...], w_ref[...], preferred_element_type=jnp.float32)

    @pl.when(k == 0)
    def _init():
        acc_ref[...] = contrib          # first step overwrites -> no zero-init pass

    @pl.when(k != 0)
    def _accum():
        acc_ref[...] += contrib

    @pl.when(k == pl.num_programs(2) - 1)
    def _store():
        # Bias added exactly once, in the epilogue.
        o_ref[...] = (acc_ref[...] + b_ref[...]).astype(o_ref.dtype)


def _lm_head_kernel_single_k(x_ref, w_ref, b_ref, o_ref):
    """Whole H fits in one K tile: no accumulator read-modify-write at all."""
    o_ref[...] = (jnp.dot(x_ref[...], w_ref[...], preferred_element_type=jnp.float32)
                  + b_ref[...]).astype(o_ref.dtype)


# --------------------------------------------------------------------------- #
# One-time parameter preparation (transpose + pad + cast, done once, reused)
# --------------------------------------------------------------------------- #
class PreparedLMHead(NamedTuple):
    w_t: jax.Array      # (H_pad, V_pad), compute dtype, MXU-canonical transposed weight
    bias2d: jax.Array   # (1, V_pad), float32
    vocab_size: int
    hidden: int
    tn: int
    tk: int


def lm_head_prepare(weight, bias, *, compute_dtype=jnp.bfloat16,
                    tn: Optional[int] = None, tk: Optional[int] = None) -> PreparedLMHead:
    """Transpose/pad/cast the (V, H) linear weight ONCE.

    Keeping the weight pre-transposed to (H_pad, V_pad) in the compute dtype
    removes 2-3 full HBM passes per forward over the largest tensor and keeps
    the in-kernel contraction in MXU-canonical (m,k)x(k,n) form (no XLU
    transpose risk)."""
    V, H = weight.shape
    tn = 2048 if tn is None else tn
    tk = 1024 if tk is None else tk
    tk = min(tk, _round_up(H, 128))     # full-H reduction for BERT-sized hidden
    tn = min(tn, _round_up(V, 128))
    H_pad = _round_up(H, tk)
    V_pad = _round_up(V, tn)

    w_t = weight.astype(compute_dtype).T                # (H, V)
    if (H_pad, V_pad) != (H, V):
        w_t = jnp.pad(w_t, ((0, H_pad - H), (0, V_pad - V)))
    b = bias.astype(jnp.float32)
    if V_pad != V:
        b = jnp.pad(b, (0, V_pad - V))
    return PreparedLMHead(w_t, b.reshape(1, V_pad), V, H, tn, tk)


# --------------------------------------------------------------------------- #
# Hot path
# --------------------------------------------------------------------------- #
def lm_head_apply(x, params: PreparedLMHead, *, tm: Optional[int] = None,
                  out_dtype=None):
    """logits = x @ W.T + b for x of shape (..., H).  Returns (..., V)."""
    lead = x.shape[:-1]
    H = x.shape[-1]
    assert H == params.hidden, (H, params.hidden)
    M = int(math.prod(lead)) if lead else 1
    out_dtype = jnp.dtype(out_dtype if out_dtype is not None else x.dtype)

    compute_dtype = params.w_t.dtype
    in_itemsize = jnp.dtype(compute_dtype).itemsize
    H_pad, V_pad = params.w_t.shape
    tn, tk = params.tn, params.tk
    V = params.vocab_size

    cap = _vmem_capacity_bytes()
    budget = int(0.70 * cap)            # headroom for Mosaic internal scratch

    # Per-generation tm: big-VMEM chips (v5e/v6e, 128 MiB) afford a 1024-row
    # activation tile (v6e needs ~680 flop/B to be compute-bound); v7x
    # (64 MiB VMEM but 3.2 TB/s HBM) only needs ~512 rows.
    if tm is None:
        tm = 1024 if cap >= (96 << 20) else 512
    tm = min(tm, _round_up(M, 8))       # small-M / decode => single M tile

    k_steps = H_pad // tk
    m_steps_est = _round_up(M, tm) // tm

    # Triple-buffer the weight stream in the decode / tiny-M regime (pure
    # weight-bandwidth bound there): cheap VMEM, hides DMA jitter.
    w_bufs = 3 if (m_steps_est == 1 and tm <= 64
                   and (V_pad // tn) * k_steps >= 3) else 2

    def working_set(tm_, tn_):
        acc = tm_ * tn_ * 4 if k_steps > 1 else 0
        return (2 * tm_ * tk * in_itemsize          # x double buffer
                + w_bufs * tk * tn_ * in_itemsize   # weight buffers
                + 2 * tn_ * 4                       # bias double buffer
                + acc                               # f32 accumulator
                + 2 * tm_ * tn_ * out_dtype.itemsize)  # out double buffer

    # Shrink tiles (tm first, then tn) if the working set would not fit VMEM.
    while working_set(tm, tn) > budget and tm >= 512:
        tm //= 2
    while working_set(tm, tn) > budget and tn >= 512 and tn % 256 == 0:
        tn //= 2

    M_pad = _round_up(M, tm)
    m_steps = M_pad // tm

    # v7x has 2 TensorCores: if M degenerates to a single tile, make sure the
    # V axis still exposes >= 2 parallel tiles so both cores get work.
    if m_steps == 1 and V_pad // tn == 1 and V_pad >= 256 and (V_pad // 2) % 128 == 0:
        tn = V_pad // 2

    n_steps = V_pad // tn
    grid = (m_steps, n_steps, k_steps)

    ws = working_set(tm, tn)
    vmem_limit = int(min(max(ws + (16 << 20), 32 << 20), int(0.85 * cap)))

    # ---- per-call x prep (only the activations are touched on the hot path) --
    x2d = x.reshape(M, H).astype(compute_dtype)
    if (M_pad, H_pad) != (M, H):
        x2d = jnp.pad(x2d, ((0, M_pad - M), (0, H_pad - H)))

    # ---- specs ---------------------------------------------------------------
    x_spec = pl.BlockSpec((tm, tk), lambda i, j, k: (i, k))
    w_spec = pl.BlockSpec((tk, tn), lambda i, j, k: (k, j))
    if w_bufs == 3:
        try:
            w_spec = pl.BlockSpec((tk, tn), lambda i, j, k: (k, j),
                                  pipeline_mode=pl.Buffered(3))
        except Exception:
            w_bufs = 2  # older API: fall back to default double buffering
    b_spec = pl.BlockSpec((1, tn), lambda i, j, k: (0, j))
    o_spec = pl.BlockSpec((tm, tn), lambda i, j, k: (i, j))

    if k_steps == 1:
        kernel = _lm_head_kernel_single_k
        scratch = []
    else:
        kernel = _lm_head_kernel_acc
        scratch = [pltpu.VMEM((tm, tn), jnp.float32)]

    # Advisory cost: account for weight/x re-streaming across the tiled grid.
    cost = pl.CostEstimate(
        flops=2 * M_pad * H_pad * V_pad,
        transcendentals=0,
        bytes_accessed=int(
            n_steps * M_pad * H_pad * in_itemsize      # x streamed per V tile
            + m_steps * V_pad * H_pad * in_itemsize    # W streamed per M tile
            + m_steps * V_pad * 4                      # bias
            + M_pad * V_pad * out_dtype.itemsize))     # logits writeback

    out2d = pl.pallas_call(
        kernel,
        out_shape=jax.ShapeDtypeStruct((M_pad, V_pad), out_dtype),
        grid_spec=pltpu.PrefetchScalarGridSpec(
            num_scalar_prefetch=0,
            grid=grid,
            in_specs=[x_spec, w_spec, b_spec],
            out_specs=o_spec,
            scratch_shapes=scratch),
        compiler_params=pltpu.CompilerParams(
            dimension_semantics=("parallel", "parallel", "arbitrary"),
            vmem_limit_bytes=vmem_limit),
        cost_estimate=cost,
    )(x2d, params.w_t, params.bias2d)

    return out2d[:M, :V].reshape(*lead, V)


def masked_language_model_forward(x, weight, bias, *, compute_dtype=jnp.bfloat16,
                                  out_dtype=None, tm=None, tn=None, tk=None):
    """One-shot convenience path matching the nn.Module signature.

    NOTE: this prepares (transposes/pads/casts) the weight per call.  For real
    training/inference, call lm_head_prepare() once and reuse the result with
    lm_head_apply() so the large (V, H) weight never takes extra HBM passes.
    """
    p = lm_head_prepare(weight, bias, compute_dtype=compute_dtype, tn=tn, tk=tk)
    return lm_head_apply(x, p, tm=tm, out_dtype=out_dtype)


if __name__ == "__main__":
    # Small shapes consistent with the module (BERT-style (batch, seq, hidden)).
    batch, seq, hidden, vocab_size = 2, 8, 32, 128

    key = jax.random.PRNGKey(0)
    kx, kw, kb = jax.random.split(key, 3)

    x = jax.random.normal(kx, (batch, seq, hidden), dtype=jnp.float32)

    # Deterministic init mimicking nn.Linear's uniform(-1/sqrt(H), 1/sqrt(H)).
    bound = 1.0 / (hidden ** 0.5)
    weight = jax.random.uniform(kw, (vocab_size, hidden),
                                minval=-bound, maxval=bound, dtype=jnp.float32)
    bias = jax.random.uniform(kb, (vocab_size,),
                              minval=-bound, maxval=bound, dtype=jnp.float32)

    # Recommended path: prepare once, reuse for every forward call.
    params = lm_head_prepare(weight, bias)
    logits = lm_head_apply(x, params)
    jax.block_until_ready(logits)

    # Reference with the same bf16 operand cast + f32 accumulation.
    xb = x.astype(jnp.bfloat16).astype(jnp.float32)
    wb = weight.astype(jnp.bfloat16).astype(jnp.float32)
    ref = (xb.reshape(-1, hidden) @ wb.T + bias).reshape(batch, seq, vocab_size)

    assert logits.shape == (batch, seq, vocab_size)
    assert logits.dtype == x.dtype
    assert jnp.allclose(logits, ref, atol=1e-2, rtol=1e-2), \
        float(jnp.max(jnp.abs(logits - ref)))

    # Also exercise the one-shot convenience wrapper.
    logits2 = masked_language_model_forward(x, weight, bias)
    jax.block_until_ready(logits2)
    assert jnp.allclose(logits2, ref, atol=1e-2, rtol=1e-2)

    # TODO(synk): LogSoftmax is defined in __init__ but never applied in the
    # reference forward(), so it is intentionally not fused here.

    print("KERNEL_OK")
</pallas_src>

<mosaic_0001>
module attributes {stable_mosaic.version = 11 : i64} {
  func.func @_lm_head_kernel_single_k(%arg0: i32, %arg1: i32, %arg2: i32, %arg3: memref<16x128xbf16, #tpu.memory_space<vmem>>, %arg4: memref<128x128xbf16, #tpu.memory_space<vmem>>, %arg5: memref<1x128xf32, #tpu.memory_space<vmem>>, %arg6: memref<16x128xf32, #tpu.memory_space<vmem>>) attributes {dimension_semantics = [#tpu.dimension_semantics<parallel>, #tpu.dimension_semantics<parallel>, #tpu.dimension_semantics<arbitrary>], iteration_bounds = array<i64: 1, 1, 1>, scalar_prefetch = 0 : i64, scratch_operands = 0 : i64, tpu.core_type = #tpu.core_type<tc>, window_params = [{transform_indices = @transform_0, window_bounds = array<i64: 16, 128>}, {transform_indices = @transform_1, window_bounds = array<i64: 128, 128>}, {transform_indices = @transform_2, window_bounds = array<i64: 1, 128>}, {transform_indices = @transform_3, window_bounds = array<i64: 16, 128>}]} {
    %c0 = arith.constant 0 : index
    %c0_0 = arith.constant 0 : index
    %0 = vector.load %arg3[%c0, %c0_0] : memref<16x128xbf16, #tpu.memory_space<vmem>>, vector<16x128xbf16>
    %c0_1 = arith.constant 0 : index
    %c0_2 = arith.constant 0 : index
    %1 = vector.load %arg4[%c0_1, %c0_2] : memref<128x128xbf16, #tpu.memory_space<vmem>>, vector<128x128xbf16>
    %cst = arith.constant dense<0.000000e+00> : vector<16x128xf32>
    %2 = tpu.matmul %0, %1, %cst {dimension_numbers = #tpu.dot_dimension_numbers<[1], [0], [0], [1], [0, 0, 1, 1], [], []>} : vector<16x128xbf16>, vector<128x128xbf16>, vector<16x128xf32> -> vector<16x128xf32>
    %c0_3 = arith.constant 0 : index
    %c0_4 = arith.constant 0 : index
    %3 = vector.load %arg5[%c0_3, %c0_4] : memref<1x128xf32, #tpu.memory_space<vmem>>, vector<1x128xf32>
    %4 = vector.broadcast %3 : vector<1x128xf32> to vector<16x128xf32>
    %5 = arith.addf %2, %4 : vector<16x128xf32>
    %c0_5 = arith.constant 0 : index
    %c0_6 = arith.constant 0 : index
    %6 = vector.load %arg6[%c0_5, %c0_6] : memref<16x128xf32, #tpu.memory_space<vmem>>, vector<16x128xf32>
    tpu.vector_store %arg6[%c0_5, %c0_6], %5 {strides = array<i32>} : memref<16x128xf32, #tpu.memory_space<vmem>>, vector<16x128xf32>,
    return
  }
  func.func @transform_0(%arg0: i32, %arg1: i32, %arg2: i32) -> (i32, i32) {
    %c0_i32 = arith.constant 0 : i32
    return %arg0, %arg2 : i32, i32
  }
  func.func @transform_1(%arg0: i32, %arg1: i32, %arg2: i32) -> (i32, i32) {
    %c0_i32 = arith.constant 0 : i32
    return %arg2, %arg1 : i32, i32
  }
  func.func @transform_2(%arg0: i32, %arg1: i32, %arg2: i32) -> (i32, i32) {
    %c0_i32 = arith.constant 0 : i32
    %c0_i32_0 = arith.constant 0 : i32
    return %c0_i32, %arg1 : i32, i32
  }
  func.func @transform_3(%arg0: i32, %arg1: i32, %arg2: i32) -> (i32, i32) {
    %c0_i32 = arith.constant 0 : i32
    return %arg0, %arg1 : i32, i32
  }
}

</mosaic_0001>

<bundles_post_ra>
// kernel: tpu_custom_call.1
= control target key start
LH: loop header
LB: loop body
LE: loop exit
PB: predicated region body
PF: predicated region fallthrough
CT: control target
= control target key end

     0   :  { %8 = vsyncpa [#allocation3], 0  ;;  %s329_s0 = inlined_call_operand.hbm [shape: bf16[16,128], index: 0, kind: input, shape index: {}]   ;;  %s330_s1 = inlined_call_operand.hbm [shape: bf16[128,128], index: 1, kind: input, shape index: {}]   ;;  %s331_s2 = inlined_call_operand.vmem [shape: f32[1,128], index: 2, kind: input, shape index: {}]   ;;  %s332_s3 = inlined_call_operand.hbm [shape: f32[16,128], index: 3, kind: output, shape index: {}]  }
   0x1   :  { %9 = vsyncpa [#allocation6], 0 }
   0x2   :  { %10 = vsyncpa [#allocation4], 0  ;;  %s15_s14 = sshll.u32 %s329_s0, 4  ;;  %s290_s15 = smov [#allocation2]   ;;  %s16_s14 = int_to_ptr.hbm [resolvable:$true] %s15_s14 }
   0x3   :  { %s17_s16 = sshll.u32 %s290_s15, 4  ;;  %s28_s19 = sshll.u32 %s330_s1, 4  ;;  %s18_s16 = int_to_ptr.vmem [resolvable:$true] %s17_s16  ;;  %s29_s19 = int_to_ptr.hbm [resolvable:$true] %s28_s19 }
   0x4   :  { %s291_s20 = smov 64   ;;  %s292_s21 = smov 4  }
   0x5   :  { %23 = dma.hbm_to_vmem [thread:$0]  %s16_s14, 128, %s18_s16, [#allocation3], %s291_s20, %s291_s20, %s292_s21  }
   0x6   :  { %s293_s22 = smov [#allocation5]  }
   0x7   :  { %s30_s23 = sshll.u32 %s293_s22, 4  ;;  %s31_s23 = int_to_ptr.vmem [resolvable:$true] %s30_s23 }
   0x8   :  { %36 = dma.hbm_to_vmem [thread:$0]  %s29_s19, 1024, %s31_s23, [#allocation6], %s291_s20, %s291_s20, %s292_s21  }
   0x9   :  { %284 = dma.done.wait [#allocation3], 128  }
   0xa   :  { %285 = vsyncadd [#allocation3], 4294967168 }
   0xb   :  { %286 = dma.done.wait [#allocation6], 1024  }
   0xc   :  { %287 = vsyncadd [#allocation6], 4294966272  ;;  %v203_v0 = vld [vmem:[#allocation5 + $0x38] sm:$0xff]  ;;  %v202_v1 = vld [vmem:[#allocation5 + $0x30] sm:$0xff]  ;;  %s294_s24 = smov [#allocation7]   ;;  %s145_s28 = sshll.u32 %s332_s3, 4  ;;  %s146_s28 = int_to_ptr.hbm [resolvable:$true] %s145_s28 }
   0xd   :  { %123 = vmatpush.bf16.msra.mxu0 %v203_v0  ;;  %v201_v2 = vld [vmem:[#allocation5 + $0x28] sm:$0xff]  ;;  %v200_v3 = vld [vmem:[#allocation5 + $0x20] sm:$0xff]  ;;  %v199_v4 = vld [vmem:[#allocation5 + $0x18] sm:$0xff]  ;;  %s143_s25 = sshll.u32 %s294_s24, 4  ;;  %s295_s29 = smov 128   ;;  %s144_s25 = int_to_ptr.vmem [resolvable:$true] %s143_s25 }
   0xe   :  { %v198_v5 = vld [vmem:[#allocation5 + $0x10] sm:$0xff]  ;;  %v197_v6 = vld [vmem:[#allocation5 + $0x8] sm:$0xff]  ;;  %v196_v7 = vld [vmem:[#allocation5] sm:$0xff]  ;;  %s296_s30 = smov 8  }
   0xf   :  { %v195_v8 = vld [vmem:[#allocation2] sm:$0xff] }
  0x10   :  { %v211_v9 = vld [vmem:[%s331_s2] ss:$0 sm:$0xff] }
  0x11   :  { %124 = vmatpush.bf16.msra.mxu0 %v202_v1 }
  0x15   :  { %125 = vmatpush.bf16.msra.mxu0 %v201_v2 }
  0x19   :  { %126 = vmatpush.bf16.msra.mxu0 %v200_v3 }
  0x1d   :  { %127 = vmatpush.bf16.msra.mxu0 %v199_v4 }
  0x21   :  { %128 = vmatpush.bf16.msra.mxu0 %v198_v5 }
  0x25   :  { %129 = vmatpush.bf16.msra.mxu0 %v197_v6 }
  0x29   :  { %130 = vmatpush.bf16.msra.mxu0 %v196_v7 }
  0x2c   :  { %131 = vmatmul.bf16.vlgmr.msra.gmra.mxu0 %v195_v8 }
  0xa9   :  { %v132_v10 = vpop.f32.mrf.mxu0 }
  0xaa   :  { %v133_v11 = vadd.f32 %v211_v9, %v132_v10 }
  0xac   :  { %137 = vst [vmem:[#allocation7] sm:$0xff] %v133_v11 }
  0xb1   :  { %v134_v12 = vpop.f32.mrf.mxu0 }
  0xb2   :  { %v135_v13 = vadd.f32 %v211_v9, %v134_v12 }
  0xb4   :  { %138 = vst [vmem:[#allocation7 + $0x8] sm:$0xff] %v135_v13 }
  0xb5   :  { %151 = dma.vmem_to_hbm [thread:$0]  %s144_s25, 256, %s146_s28, [#allocation4], %s295_s29, %s295_s29, %s296_s30  }
  0xb6   :  { %288 = dma.done.wait [#allocation4], 256  }
  0xb7   :  { %289 = vsyncadd [#allocation4], 4294967040 }
  0xb8   :  { %156 = vsyncpa [#allocation3], 1 }
  0xb9   :  { %157 = vsyncpa [#allocation6], 1 }
  0xba   :  { %158 = vsyncpa [#allocation4], 1 }

</bundles_post_ra>
